<compile_context>
chip_gen: v6e
topology: v6e:2x2x1
jax: 0.10.0
libtpu: 0.0.40
codegen_flags: <defaults>
</compile_context>

<pallas_src>
from functools import partial

import numpy as np
import jax
import jax.numpy as jnp
from jax.experimental import pallas as pl
from jax.experimental.pallas import tpu as pltpu


def _build_avg_matrix(L, kernel_sizes):
    """W[i, j] = d(moving_mean[i]) / d(x[j]) for the multi-kernel, replicate-
    padded, stride-1 moving average — exactly the PyTorch module semantics:
    ma_k[i] = (1/k) * sum_{d=-p..p} x[clip(i+d, 0, L-1)],  p = (k-1)//2,
    moving_mean = mean_k(ma_k)."""
    W = np.zeros((L, L), dtype=np.float64)
    idx = np.arange(L)
    for k in kernel_sizes:
        p = (k - 1) // 2
        for d in range(-p, p + 1):
            j = np.clip(idx + d, 0, L - 1)
            np.add.at(W, (idx, j), 1.0 / k)   # add.at handles clamped duplicates
    W /= float(len(kernel_sizes))
    return jnp.asarray(W, dtype=jnp.float32)


def _decomp_kernel(w_ref, x_ref, sea_ref, mean_ref, *, bt, tl, full_l):
    """Block: w (tl, L) f32, x (bt, L, tc); outputs (bt, tl, tc)."""
    w = w_ref[...]                                        # (tl, L), resident
    if not full_l:
        row_off = pl.multiple_of(pl.program_id(2) * tl, 8)
    for b in range(bt):                                   # static unroll, bt <= 8
        x = x_ref[b].astype(jnp.float32)                  # (L, tc)
        # Multi-window moving average for output rows of this block: one MXU
        # matmul (full f32 precision to match the PyTorch reference numerics).
        mean = jnp.dot(w, x,
                       precision=jax.lax.Precision.HIGHEST,
                       preferred_element_type=jnp.float32)  # (tl, tc)
        if full_l:
            x_rows = x
        else:
            x_rows = x_ref[b, pl.ds(row_off, tl), :].astype(jnp.float32)
        sea_ref[b] = (x_rows - mean).astype(sea_ref.dtype)   # sea = x - mean
        mean_ref[b] = mean.astype(mean_ref.dtype)


def _num_tensorcores():
    """2 on v7x-class chips (megacore sharding of parallel grid axes), else 1."""
    try:
        kind = jax.devices()[0].device_kind.lower()
    except Exception:
        return 1
    return 2 if ("v7" in kind or "tpu7" in kind) else 1


def _choose_tiles(B, L, C, n_cores,
                  x_budget=2 * 1024 * 1024, w_budget=4 * 1024 * 1024,
                  max_bt=8):
    # Channel tile: full C when it fits (mandatory when C < 128 because of the
    # (8, 128) block-shape rule), else a multiple of 128 within budget.
    if C <= 128 or C * L * 4 <= x_budget:
        tc = C
    else:
        tc = (x_budget // (L * 4 * 128)) * 128
        tc = max(128, min(tc, (C // 128) * 128))
    # Batch tile: largest divisor of B (capped for unroll size) within budget.
    bt = 1
    for cand in range(1, min(B, max_bt) + 1):
        if B % cand == 0 and cand * L * tc * 4 <= x_budget:
            bt = cand
    # Keep >= 2 parallel grid steps only on 2-TensorCore chips (v7x).
    if n_cores >= 2 and B >= 2 and pl.cdiv(C, tc) == 1:
        bt = min(bt, max(1, B // 2))
        while B % bt:
            bt -= 1
    # W row-block: full L when the (L, L) matrix fits, else the largest
    # multiple-of-8 divisor of L that does.
    tl = L
    if L * L * 4 > w_budget:
        for cand in range(8, L, 8):
            if L % cand == 0 and cand * L * 4 <= w_budget:
                tl = cand
        # TODO(synk): if L has no suitable multiple-of-8 divisor we keep the
        # full (L, L) matrix; a prefix-sum formulation would be needed instead.
    return bt, tc, tl


def series_decomp_multi(x, kernel_sizes):
    """x: (B, L, C) array; kernel_sizes: list of odd ints.
    Returns (sea, moving_mean), both (B, L, C) in x.dtype."""
    B, L, C = x.shape
    ks = [int(k) for k in kernel_sizes]
    if not ks:
        raise ValueError("kernel_sizes must be non-empty")
    for k in ks:
        if k < 1 or k % 2 == 0:
            raise ValueError(
                "series_decomp_multi requires odd kernel sizes "
                f"(only odd k keeps the sequence length); got {k}")

    w = _build_avg_matrix(L, ks)                       # (L, L) f32, trace-time const
    itemsize = jnp.dtype(x.dtype).itemsize
    n_cores = _num_tensorcores()
    bt, tc, tl = _choose_tiles(B, L, C, n_cores)
    nb, nc, nl = B // bt, pl.cdiv(C, tc), L // tl

    w_spec = pl.BlockSpec((tl, L), lambda b, c, l: (l, 0))
    x_spec = pl.BlockSpec((bt, L, tc), lambda b, c, l: (b, 0, c))
    o_spec = pl.BlockSpec((bt, tl, tc), lambda b, c, l: (b, l, c))

    # Double-buffered blocks + a few f32 temporaries; raise the scoped-VMEM
    # limit (v5e default is 16 MiB), stay safely under v7x's 64 MiB physical.
    est = (2 * tl * L * 4 + 2 * bt * L * tc * itemsize
           + 4 * bt * tl * tc * itemsize + 6 * L * tc * 4)
    vmem_limit = int(min(56 * 2**20, max(32 * 2**20, 2 * est)))

    kernel = partial(_decomp_kernel, bt=bt, tl=tl, full_l=(tl == L))
    sea, moving_mean = pl.pallas_call(
        kernel,
        out_shape=(jax.ShapeDtypeStruct((B, L, C), x.dtype),
                   jax.ShapeDtypeStruct((B, L, C), x.dtype)),
        grid=(nb, nc, nl),
        in_specs=[w_spec, x_spec],
        out_specs=(o_spec, o_spec),
        compiler_params=pltpu.CompilerParams(
            dimension_semantics=("parallel", "parallel", "arbitrary"),
            vmem_limit_bytes=vmem_limit),
    )(w, x)
    return sea, moving_mean


def _reference(x, kernel_sizes):
    # Pure-JAX port of the PyTorch forward, for verification.
    L = x.shape[1]
    means, res = [], []
    for k in kernel_sizes:
        pad = (k - 1) // 2
        front = jnp.repeat(x[:, 0:1, :], pad, axis=1)
        end = jnp.repeat(x[:, -1:, :], pad, axis=1)
        xp = jnp.concatenate([front, x, end], axis=1)
        ma = jnp.mean(
            jnp.stack([xp[:, i:i + L, :] for i in range(k)], axis=0), axis=0)
        means.append(ma)
        res.append(x - ma)
    sea = sum(res) / len(res)
    moving_mean = sum(means) / len(means)
    return sea, moving_mean


if __name__ == "__main__":
    # Primary config (small shapes consistent with the module's (B, L, C) input).
    B, L, C = 2, 16, 8
    kernel_sizes = [3, 5, 7]
    x = jax.random.normal(jax.random.PRNGKey(0), (B, L, C), dtype=jnp.float32)

    sea, moving_mean = series_decomp_multi(x, kernel_sizes)
    jax.block_until_ready((sea, moving_mean))

    sea_ref, mean_ref = _reference(x, kernel_sizes)
    assert jnp.allclose(sea, sea_ref, atol=1e-4, rtol=1e-4)
    assert jnp.allclose(moving_mean, mean_ref, atol=1e-4, rtol=1e-4)

    # Second config: longer L, odd C, bigger windows; exercises batch tiling.
    B2, L2, C2 = 4, 96, 7
    kernel_sizes2 = [5, 25]
    x2 = jax.random.normal(jax.random.PRNGKey(1), (B2, L2, C2), dtype=jnp.float32)

    sea2, mean2 = series_decomp_multi(x2, kernel_sizes2)
    jax.block_until_ready((sea2, mean2))

    sea2_ref, mean2_ref = _reference(x2, kernel_sizes2)
    assert jnp.allclose(sea2, sea2_ref, atol=1e-4, rtol=1e-4)
    assert jnp.allclose(mean2, mean2_ref, atol=1e-4, rtol=1e-4)

    print("KERNEL_OK")
</pallas_src>

<mosaic_0001>
module attributes {stable_mosaic.version = 11 : i64} {
  func.func @_decomp_kernel(%arg0: i32, %arg1: i32, %arg2: i32, %arg3: memref<16x16xf32, #tpu.memory_space<vmem>>, %arg4: memref<2x16x8xf32, #tpu.memory_space<vmem>>, %arg5: memref<2x16x8xf32, #tpu.memory_space<vmem>>, %arg6: memref<2x16x8xf32, #tpu.memory_space<vmem>>) attributes {dimension_semantics = [#tpu.dimension_semantics<parallel>, #tpu.dimension_semantics<parallel>, #tpu.dimension_semantics<arbitrary>], iteration_bounds = array<i64: 1, 1, 1>, scalar_prefetch = 0 : i64, scratch_operands = 0 : i64, tpu.core_type = #tpu.core_type<tc>, window_params = [{transform_indices = @transform_0, window_bounds = array<i64: 16, 16>}, {transform_indices = @transform_1, window_bounds = array<i64: 2, 16, 8>}, {transform_indices = @transform_2, window_bounds = array<i64: 2, 16, 8>}, {transform_indices = @transform_3, window_bounds = array<i64: 2, 16, 8>}]} {
    %c0 = arith.constant 0 : index
    %c0_0 = arith.constant 0 : index
    %0 = vector.load %arg3[%c0, %c0_0] : memref<16x16xf32, #tpu.memory_space<vmem>>, vector<16x16xf32>
    %c0_1 = arith.constant 0 : index
    %c0_2 = arith.constant 0 : index
    %c0_3 = arith.constant 0 : index
    %1 = vector.load %arg4[%c0_1, %c0_2, %c0_3] : memref<2x16x8xf32, #tpu.memory_space<vmem>>, vector<1x16x8xf32>
    %2 = vector.shape_cast %1 : vector<1x16x8xf32> to vector<16x8xf32>
    %cst = arith.constant dense<0.000000e+00> : vector<16x8xf32>
    %3 = tpu.matmul %0, %2, %cst {dimension_numbers = #tpu.dot_dimension_numbers<[1], [0], [0], [1], [0, 0, 1, 1], [], []>, precision = #tpu.contract_precision<fp32>} : vector<16x16xf32>, vector<16x8xf32>, vector<16x8xf32> -> vector<16x8xf32>
    %4 = arith.subf %2, %3 : vector<16x8xf32>
    %c0_4 = arith.constant 0 : index
    %c0_5 = arith.constant 0 : index
    %c0_6 = arith.constant 0 : index
    %5 = vector.load %arg5[%c0_4, %c0_5, %c0_6] : memref<2x16x8xf32, #tpu.memory_space<vmem>>, vector<1x16x8xf32>
    %6 = vector.shape_cast %5 : vector<1x16x8xf32> to vector<16x8xf32>
    %7 = vector.shape_cast %4 : vector<16x8xf32> to vector<1x16x8xf32>
    tpu.vector_store %arg5[%c0_4, %c0_5, %c0_6], %7 {strides = array<i32>} : memref<2x16x8xf32, #tpu.memory_space<vmem>>, vector<1x16x8xf32>,
    %c0_7 = arith.constant 0 : index
    %c0_8 = arith.constant 0 : index
    %c0_9 = arith.constant 0 : index
    %8 = vector.load %arg6[%c0_7, %c0_8, %c0_9] : memref<2x16x8xf32, #tpu.memory_space<vmem>>, vector<1x16x8xf32>
    %9 = vector.shape_cast %8 : vector<1x16x8xf32> to vector<16x8xf32>
    %10 = vector.shape_cast %3 : vector<16x8xf32> to vector<1x16x8xf32>
    tpu.vector_store %arg6[%c0_7, %c0_8, %c0_9], %10 {strides = array<i32>} : memref<2x16x8xf32, #tpu.memory_space<vmem>>, vector<1x16x8xf32>,
    %c1 = arith.constant 1 : index
    %c0_10 = arith.constant 0 : index
    %c0_11 = arith.constant 0 : index
    %11 = vector.load %arg4[%c1, %c0_10, %c0_11] : memref<2x16x8xf32, #tpu.memory_space<vmem>>, vector<1x16x8xf32>
    %12 = vector.shape_cast %11 : vector<1x16x8xf32> to vector<16x8xf32>
    %cst_12 = arith.constant dense<0.000000e+00> : vector<16x8xf32>
    %13 = tpu.matmul %0, %12, %cst_12 {dimension_numbers = #tpu.dot_dimension_numbers<[1], [0], [0], [1], [0, 0, 1, 1], [], []>, precision = #tpu.contract_precision<fp32>} : vector<16x16xf32>, vector<16x8xf32>, vector<16x8xf32> -> vector<16x8xf32>
    %14 = arith.subf %12, %13 : vector<16x8xf32>
    %c1_13 = arith.constant 1 : index
    %c0_14 = arith.constant 0 : index
    %c0_15 = arith.constant 0 : index
    %15 = vector.load %arg5[%c1_13, %c0_14, %c0_15] : memref<2x16x8xf32, #tpu.memory_space<vmem>>, vector<1x16x8xf32>
    %16 = vector.shape_cast %15 : vector<1x16x8xf32> to vector<16x8xf32>
    %17 = vector.shape_cast %14 : vector<16x8xf32> to vector<1x16x8xf32>
    tpu.vector_store %arg5[%c1_13, %c0_14, %c0_15], %17 {strides = array<i32>} : memref<2x16x8xf32, #tpu.memory_space<vmem>>, vector<1x16x8xf32>,
    %c1_16 = arith.constant 1 : index
    %c0_17 = arith.constant 0 : index
    %c0_18 = arith.constant 0 : index
    %18 = vector.load %arg6[%c1_16, %c0_17, %c0_18] : memref<2x16x8xf32, #tpu.memory_space<vmem>>, vector<1x16x8xf32>
    %19 = vector.shape_cast %18 : vector<1x16x8xf32> to vector<16x8xf32>
    %20 = vector.shape_cast %13 : vector<16x8xf32> to vector<1x16x8xf32>
    tpu.vector_store %arg6[%c1_16, %c0_17, %c0_18], %20 {strides = array<i32>} : memref<2x16x8xf32, #tpu.memory_space<vmem>>, vector<1x16x8xf32>,
    return
  }
  func.func @transform_0(%arg0: i32, %arg1: i32, %arg2: i32) -> (i32, i32) {
    %c0_i32 = arith.constant 0 : i32
    %c0_i32_0 = arith.constant 0 : i32
    return %arg2, %c0_i32 : i32, i32
  }
  func.func @transform_1(%arg0: i32, %arg1: i32, %arg2: i32) -> (i32, i32, i32) {
    %c0_i32 = arith.constant 0 : i32
    %c0_i32_0 = arith.constant 0 : i32
    return %arg0, %c0_i32, %arg1 : i32, i32, i32
  }
  func.func @transform_2(%arg0: i32, %arg1: i32, %arg2: i32) -> (i32, i32, i32) {
    %c0_i32 = arith.constant 0 : i32
    return %arg0, %arg2, %arg1 : i32, i32, i32
  }
  func.func @transform_3(%arg0: i32, %arg1: i32, %arg2: i32) -> (i32, i32, i32) {
    %c0_i32 = arith.constant 0 : i32
    return %arg0, %arg2, %arg1 : i32, i32, i32
  }
}

</mosaic_0001>

<bundles_post_ra>
// kernel: tpu_custom_call.1
= control target key start
LH: loop header
LB: loop body
LE: loop exit
PB: predicated region body
PF: predicated region fallthrough
CT: control target
= control target key end

     0   :  { %vm17_vm0 = vcmask 130048   ;;  %vm528_vm1 = vcmask 64512   ;;  %s1349_s1 = inlined_call_operand.vmem [shape: f32[2,16,8], index: 1, kind: input, shape index: {}]   ;;  %s1350_s0 = inlined_call_operand.vmem [shape: f32[16,16], index: 0, kind: input, shape index: {}]   ;;  %s1351_s3 = inlined_call_operand.vmem [shape: f32[2,16,8], index: 3, kind: output, shape index: {1}]   ;;  %s1352_s2 = inlined_call_operand.vmem [shape: f32[2,16,8], index: 2, kind: output, shape index: {0}]  }
   0x1   :  { %v1215_v0 = vld [vmem:[%s1349_s1 + $0x8] sm:$0xff]  ;;  %v1220_v1 = vld [vmem:[%s1349_s1] sm:$0xff]  ;;  %v1250_v16 = vld [vmem:[%s1349_s1 + $0x18] sm:$0xff] }
   0x2   :  { %v13_v2 = vld [vmem:[%s1350_s0] sm:$0xff]  ;;  %v53_v3 = vand.u32 4294901760, %v1215_v0  ;;  %v1227_v4 = vand.u32 4294901760, %v1220_v1  ;;  %v14_v5 = vld [vmem:[%s1350_s0 + $0x8] sm:$0xff]  ;;  %v1262_v21 = vld [vmem:[%s1349_s1 + $0x10] sm:$0xff]  ;;  %v1267_v23 = vand.u32 4294901760, %v1250_v16 }
   0x3   :  { %v19_v6 = vsel %vm17_vm0, %v13_v2, 0  ;;  %v22_v7 = vsel %vm17_vm0, %v14_v5, 0  ;;  %v1272_v28 = vand.u32 4294901760, %v1262_v21 }
   0x4   :  { %v1232_v8 = vand.u32 4294901760, %v19_v6  ;;  %1108 = vmatprep.subr.mxu0 %v53_v3  ;;  %v141_v9 = vsub.f32 %v1215_v0, %v53_v3  ;;  %v1235_v10 = vand.u32 4294901760, %v22_v7  ;;  %v148_v11 = vsub.f32 %v1220_v1, %v1227_v4 }
   0x5   :  { %1109 = vmatpush3.msra.mxu0 %v53_v3  ;;  %v653_v30 = vsub.f32 %v1250_v16, %v1267_v23  ;;  %v660_v31 = vsub.f32 %v1262_v21, %v1272_v28 }
   0x6   :  { %v1240_v12 = vsub.f32 %v19_v6, %v1232_v8  ;;  %1119 = vmatprep.mubr.f32.mxu1 %v1232_v8  ;;  %1110 = vmatprep.subr.mxu0 %v1227_v4  ;;  %v142_v13 = vand.u32 4294901760, %v141_v9  ;;  %v1245_v14 = vsub.f32 %v22_v7, %v1235_v10  ;;  %v149_v15 = vand.u32 4294901760, %v148_v11 }
   0x7   :  { %1111 = vmatpush3.msra.mxu0 %v1227_v4  ;;  %v654_v32 = vand.u32 4294901760, %v653_v30  ;;  %v661_v33 = vand.u32 4294901760, %v660_v31 }
   0x8   :  { %v1254_v17 = vand.u32 4294901760, %v1240_v12  ;;  %v143_v18 = vsub.f32 %v141_v9, %v142_v13  ;;  %v1257_v19 = vand.u32 4294901760, %v1245_v14  ;;  %v150_v20 = vsub.f32 %v148_v11, %v149_v15  ;;  %1122 = vmatprep.subr.mxu0 %v141_v9 }
   0x9   :  { %v655_v34 = vsub.f32 %v653_v30, %v654_v32  ;;  %v662_v35 = vsub.f32 %v660_v31, %v661_v33 }
   0xa   :  { %v94_v22 = vsub.f32 %v1240_v12, %v1254_v17  ;;  %v144_v24 = vand.u32 4294901760, %v143_v18  ;;  %v104_v25 = vsub.f32 %v1245_v14, %v1257_v19  ;;  %v151_v26 = vand.u32 4294901760, %v150_v20 }
   0xb   :  { %v656_v36 = vand.u32 4294901760, %v655_v34  ;;  %v663_v37 = vand.u32 4294901760, %v662_v35 }
   0xc   :  { %v95_v27 = vand.u32 4294901760, %v94_v22  ;;  %1115 = vmatprep.subr.mxu1 %v144_v24  ;;  %v105_v29 = vand.u32 4294901760, %v104_v25 }
   0xd   :  { %1116 = vmatpush3.msra.mxu1 %v144_v24 }
   0xe   :  { %1112 = vmatprep.mubr.f32.mxu0 %v95_v27  ;;  %1117 = vmatprep.subr.mxu1 %v151_v26 }
   0xf   :  { %1113 = vmatmul.mubr.f32.vlgmr.msra.gmra.mxu0 %v105_v29  ;;  %1118 = vmatpush3.msra.mxu1 %v151_v26 }
  0x10   :  { %1123 = vmatpush3.msra.mxu0 %v141_v9  ;;  %1120 = vmatmul.mubr.f32.vlgmr.msra.gmra.mxu1 %v1235_v10 }
  0x11   :  { %1124 = vmatprep.subr.mxu0 %v148_v11  ;;  %1129 = vmatprep.subr.mxu1 %v53_v3 }
  0x12   :  { %1125 = vmatpush3.msra.mxu0 %v148_v11  ;;  %1126 = vmatprep.mubr.f32.mxu0 %v1240_v12 }
  0x13   :  { %1130 = vmatpush3.msra.mxu1 %v53_v3  ;;  %1127 = vmatmul.mubr.f32.vlgmr.msra.gmra.mxu0 %v1245_v14 }
  0x14   :  { %1131 = vmatprep.subr.mxu1 %v1227_v4  ;;  %1136 = vmatprep.subr.mxu0 %v142_v13 }
  0x15   :  { %1132 = vmatpush3.msra.mxu1 %v1227_v4  ;;  %1133 = vmatprep.mubr.f32.mxu1 %v1254_v17 }
  0x16   :  { %1137 = vmatpush3.msra.mxu0 %v142_v13  ;;  %1134 = vmatmul.mubr.f32.vlgmr.msra.gmra.mxu1 %v1257_v19 }
  0x17   :  { %1138 = vmatprep.subr.mxu0 %v149_v15  ;;  %1143 = vmatprep.subr.mxu1 %v53_v3 }
  0x18   :  { %1139 = vmatpush3.msra.mxu0 %v149_v15  ;;  %1140 = vmatprep.mubr.f32.mxu0 %v1232_v8 }
  0x19   :  { %1144 = vmatpush3.msra.mxu1 %v53_v3  ;;  %1141 = vmatmul.mubr.f32.vlgmr.msra.gmra.mxu0 %v1235_v10 }
  0x1a   :  { %1145 = vmatprep.subr.mxu1 %v1227_v4  ;;  %1150 = vmatprep.subr.mxu0 %v1267_v23 }
  0x1b   :  { %1146 = vmatpush3.msra.mxu1 %v1227_v4  ;;  %1147 = vmatprep.mubr.f32.mxu1 %v1232_v8 }
  0x1c   :  { %1151 = vmatpush3.msra.mxu0 %v1267_v23  ;;  %1148 = vmatmul.mubr.f32.vlgmr.msra.gmra.mxu1 %v1235_v10 }
  0x1d   :  { %1152 = vmatprep.subr.mxu0 %v1272_v28  ;;  %1157 = vmatprep.subr.mxu1 %v656_v36 }
  0x1e   :  { %1153 = vmatpush3.msra.mxu0 %v1272_v28  ;;  %1154 = vmatprep.mubr.f32.mxu0 %v95_v27 }
  0x1f   :  { %1158 = vmatpush3.msra.mxu1 %v656_v36  ;;  %1155 = vmatmul.mubr.f32.vlgmr.msra.gmra.mxu0 %v105_v29 }
  0x20   :  { %1159 = vmatprep.subr.mxu1 %v663_v37  ;;  %1164 = vmatprep.subr.mxu0 %v653_v30 }
  0x21   :  { %1160 = vmatpush3.msra.mxu1 %v663_v37  ;;  %1161 = vmatprep.mubr.f32.mxu1 %v1232_v8 }
  0x22   :  { %1165 = vmatpush3.msra.mxu0 %v653_v30  ;;  %1162 = vmatmul.mubr.f32.vlgmr.msra.gmra.mxu1 %v1235_v10 }
  0x23   :  { %1166 = vmatprep.subr.mxu0 %v660_v31  ;;  %1171 = vmatprep.subr.mxu1 %v1267_v23 }
  0x24   :  { %1167 = vmatpush3.msra.mxu0 %v660_v31  ;;  %1168 = vmatprep.mubr.f32.mxu0 %v1240_v12 }
  0x25   :  { %1172 = vmatpush3.msra.mxu1 %v1267_v23  ;;  %1169 = vmatmul.mubr.f32.vlgmr.msra.gmra.mxu0 %v1245_v14 }
  0x26   :  { %1173 = vmatprep.subr.mxu1 %v1272_v28  ;;  %1178 = vmatprep.subr.mxu0 %v654_v32 }
  0x27   :  { %1174 = vmatpush3.msra.mxu1 %v1272_v28  ;;  %1175 = vmatprep.mubr.f32.mxu1 %v1254_v17 }
  0x28   :  { %1179 = vmatpush3.msra.mxu0 %v654_v32  ;;  %1176 = vmatmul.mubr.f32.vlgmr.msra.gmra.mxu1 %v1257_v19 }
  0x29   :  { %1180 = vmatprep.subr.mxu0 %v661_v33  ;;  %1185 = vmatprep.subr.mxu1 %v1267_v23 }
  0x2a   :  { %1181 = vmatpush3.msra.mxu0 %v661_v33  ;;  %1182 = vmatprep.mubr.f32.mxu0 %v1232_v8 }
  0x2b   :  { %1186 = vmatpush3.msra.mxu1 %v1267_v23  ;;  %1183 = vmatmul.mubr.f32.vlgmr.msra.gmra.mxu0 %v1235_v10 }
  0x2c   :  { %1187 = vmatprep.subr.mxu1 %v1272_v28  ;;  %1189 = vmatprep.mubr.f32.mxu1 %v1232_v8 }
  0x2d   :  { %1188 = vmatpush3.msra.mxu1 %v1272_v28 }
  0x2e   :  { %1190 = vmatmul.mubr.f32.vlgmr.msra.gmra.mxu1 %v1235_v10 }
  0xcf   :  { %v1114_v38 = vpop.f32.mrf.mxu0 }
  0xd0   :  { %v1121_v40 = vpop.f32.mrf.mxu1 }
  0xd1   :  { %v97_v39 = vpop.f32.mrf.mxu0  ;;  %v195_v41 = vadd.f32 %v1121_v40, %v1114_v38 }
  0xd2   :  { %v188_v42 = vpop.f32.mrf.mxu1 }
  0xd3   :  { %v189_v43 = vadd.f32 %v188_v42, %v97_v39  ;;  %v1128_v44 = vpop.f32.mrf.mxu0 }
  0xd4   :  { %v278_v45 = vadd.f32 %v1128_v44, %v195_v41 }
  0xd5   :  { %v270_v46 = vpop.f32.mrf.mxu0 }
  0xd6   :  { %v271_v47 = vadd.f32 %v270_v46, %v189_v43  ;;  %v1135_v48 = vpop.f32.mrf.mxu1 }
  0xd7   :  { %v361_v49 = vadd.f32 %v1135_v48, %v278_v45 }
  0xd8   :  { %v352_v50 = vpop.f32.mrf.mxu1 }
  0xd9   :  { %v353_v51 = vadd.f32 %v352_v50, %v271_v47  ;;  %v1142_v52 = vpop.f32.mrf.mxu0 }
  0xda   :  { %v444_v53 = vadd.f32 %v1142_v52, %v361_v49 }
  0xdb   :  { %v437_v54 = vpop.f32.mrf.mxu0 }
  0xdc   :  { %v438_v55 = vadd.f32 %v437_v54, %v353_v51  ;;  %v1149_v56 = vpop.f32.mrf.mxu1 }
  0xdd   :  { %v523_v57 = vadd.f32 %v1149_v56, %v444_v53 }
  0xde   :  { %v516_v58 = vpop.f32.mrf.mxu1 }
  0xdf   :  { %v527_v59 = vsub.f32 %v1215_v0, %v523_v57  ;;  %532 = vst.msk [vmem:[%s1351_s3 + $0x8] sm:$0xff] %vm528_vm1, %v523_v57  ;;  %v517_v60 = vadd.f32 %v516_v58, %v438_v55  ;;  %v1156_v61 = vpop.f32.mrf.mxu0 }
  0xe1   :  { %530 = vst.msk [vmem:[%s1352_s2 + $0x8] sm:$0xff] %vm528_vm1, %v527_v59  ;;  %v526_v62 = vsub.f32 %v1220_v1, %v517_v60  ;;  %531 = vst.msk [vmem:[%s1351_s3] sm:$0xff] %vm528_vm1, %v517_v60  ;;  %v609_v63 = vpop.f32.mrf.mxu0 }
  0xe2   :  { %v1163_v0 = vpop.f32.mrf.mxu1 }
  0xe3   :  { %529 = vst.msk [vmem:[%s1352_s2] sm:$0xff] %vm528_vm1, %v526_v62  ;;  %v707_v2 = vadd.f32 %v1163_v0, %v1156_v61 }
  0xe4   :  { %v700_v3 = vpop.f32.mrf.mxu1 }
  0xe5   :  { %v701_v4 = vadd.f32 %v700_v3, %v609_v63  ;;  %v1170_v5 = vpop.f32.mrf.mxu0 }
  0xe6   :  { %v790_v6 = vadd.f32 %v1170_v5, %v707_v2 }
  0xe7   :  { %v782_v7 = vpop.f32.mrf.mxu0 }
  0xe8   :  { %v783_v8 = vadd.f32 %v782_v7, %v701_v4  ;;  %v1177_v1 = vpop.f32.mrf.mxu1 }
  0xe9   :  { %v873_v9 = vadd.f32 %v1177_v1, %v790_v6 }
  0xea   :  { %v864_v10 = vpop.f32.mrf.mxu1 }
  0xeb   :  { %v865_v11 = vadd.f32 %v864_v10, %v783_v8  ;;  %v1184_v12 = vpop.f32.mrf.mxu0 }
  0xec   :  { %v956_v13 = vadd.f32 %v1184_v12, %v873_v9 }
  0xed   :  { %v949_v14 = vpop.f32.mrf.mxu0 }
  0xee   :  { %v1191_v15 = vpop.f32.mrf.mxu1  ;;  %v950_v17 = vadd.f32 %v949_v14, %v865_v11 }
  0xef   :  { %v1035_v18 = vadd.f32 %v1191_v15, %v956_v13 }
  0xf0   :  { %v1028_v19 = vpop.f32.mrf.mxu1 }
  0xf1   :  { %v1039_v20 = vsub.f32 %v1250_v16, %v1035_v18  ;;  %1059 = vst.msk [vmem:[%s1351_s3 + $0x18] sm:$0xff] %vm528_vm1, %v1035_v18  ;;  %v1029_v22 = vadd.f32 %v1028_v19, %v950_v17 }
  0xf3   :  { %1057 = vst.msk [vmem:[%s1352_s2 + $0x18] sm:$0xff] %vm528_vm1, %v1039_v20  ;;  %v1038_v23 = vsub.f32 %v1262_v21, %v1029_v22  ;;  %1058 = vst.msk [vmem:[%s1351_s3 + $0x10] sm:$0xff] %vm528_vm1, %v1029_v22 }
  0xf5   :  { %1056 = vst.msk [vmem:[%s1352_s2 + $0x10] sm:$0xff] %vm528_vm1, %v1038_v23 }

</bundles_post_ra>
